<compile_context>
chip_gen: v6e
topology: v6e:2x2x1
jax: 0.10.0
libtpu: 0.0.40
codegen_flags: <defaults>
</compile_context>

<pallas_src>
import functools

import jax
import jax.numpy as jnp
from jax.experimental import pallas as pl
from jax.experimental.pallas import tpu as pltpu

LANES = 128
TILE_MAX = 2048          # sublanes per grid step.  Mixed-dtype, double-
                         # buffered footprint at 2048 is ~6.5 MiB -> well
                         # inside the 32 MiB scoped VMEM on v5e/v6e/v7x.
SUBLANE_ALIGN = 32       # int8 planes need (32, 128) native tiling.


@functools.lru_cache(maxsize=1)
def _tensorcores_per_chip():
    """Best-effort TensorCore count per chip (capped at 2).

    Defaults to 2 so the 'parallel' split is never silently dropped on
    multi-TC chips (v7x); on single-TC chips (v5e/v6e) an extra grid axis of
    size 2 is just a serial loop with negligible overhead, but when the query
    reports 1 core we drop it entirely.
    """
    try:
        info = pltpu.get_tpu_info()
        for attr in ("num_cores", "core_count", "num_tensorcores",
                     "tensorcores_per_chip"):
            v = getattr(info, attr, None)
            if v is None:
                continue
            try:
                v = int(v)
            except Exception:
                continue
            if v > 0:
                return max(1, min(2, v))
    except Exception:
        pass
    return 2


def _round_up(x, m):
    return ((x + m - 1) // m) * m


def _opacity_kernel(has_fine, *refs):
    """Accumulates masked-MSE partial sums into the resident output block."""
    if has_fine:
        opc_ref, opf_ref, imask_ref, iw_ref, valid_ref, out_ref = refs
    else:
        opc_ref, imask_ref, iw_ref, valid_ref, out_ref = refs
        opf_ref = None

    @pl.when(pl.program_id(1) == 0)
    def _():
        out_ref[...] = jnp.zeros_like(out_ref)

    # Narrow-dtype planes are widened on the VPU (free vs. the HBM DMA).
    valid = valid_ref[...].astype(jnp.float32)        # (TILE, 128) {0,1}
    imask = imask_ref[...].astype(jnp.float32)        # (TILE, 128) {0,1}
    w = valid * iw_ref[...].astype(jnp.float32)       # numerator weight

    def groups(x):
        # (TILE,128) -> (TILE//8, 8, 128) sum over vreg groups: pure VPU adds
        # with vreg-local dataflow (no cross-sublane XLU work in the hot loop,
        # short live ranges -> no spill pressure even at TILE=2048).
        return jnp.sum(x.reshape(x.shape[0] // 8, 8, LANES), axis=0)

    ec = jnp.clip(opc_ref[...], 0.0, 1.0) - imask
    out_ref[0, 0, :, :] = out_ref[0, 0, :, :] + groups(ec * ec * w)
    out_ref[0, 1, :, :] = out_ref[0, 1, :, :] + groups(valid)

    if has_fine:
        ef = jnp.clip(opf_ref[...], 0.0, 1.0) - imask
        out_ref[0, 2, :, :] = out_ref[0, 2, :, :] + groups(ef * ef * w)


def _partial_sums(planes, has_fine, tile, ncores, tpc):
    """Runs the Pallas kernel; returns (nq,) global partial sums."""
    nq = 3 if has_fine else 2

    plane_spec = pl.BlockSpec((tile, LANES), lambda c, t: (c * tpc + t, 0))
    out_spec = pl.BlockSpec((1, nq, 8, LANES), lambda c, t: (c, 0, 0, 0))

    out = pl.pallas_call(
        functools.partial(_opacity_kernel, has_fine),
        out_shape=jax.ShapeDtypeStruct((ncores, nq, 8, LANES), jnp.float32),
        grid_spec=pltpu.PrefetchScalarGridSpec(
            num_scalar_prefetch=0,
            grid=(ncores, tpc),
            in_specs=[plane_spec] * len(planes),
            out_specs=out_spec,
        ),
        compiler_params=pltpu.CompilerParams(
            dimension_semantics=("parallel", "arbitrary"),
            vmem_limit_bytes=32 * 1024 * 1024,
        ),
    )(*planes)

    # Tiny (ncores, nq, 8, 128) final reduction stays on device.
    return jnp.sum(out, axis=(0, 2, 3))          # (nq,)


def _pack_plane(x, r_pad, dtype):
    """Flatten, cast to the streaming dtype, zero-pad, reshape lane-major."""
    # TODO(synk): this remaining pad/cast pre-pass could be removed entirely
    # by fusing producers into the pallas_call operands (CompilerParams
    # allow_input_fusion) or by streaming the raw flat arrays and masking the
    # ragged tail in-kernel; kept as a cheap narrow-dtype pass here.
    x = jnp.reshape(x, (-1,)).astype(dtype)
    pad = r_pad * LANES - x.shape[0]
    if pad:
        x = jnp.concatenate([x, jnp.zeros((pad,), dtype)])
    return x.reshape(r_pad, LANES)


@functools.partial(jax.jit, static_argnames=('tile_max',))
def opacity_loss_value(inputs, batch, coef, tile_max=TILE_MAX):
    """Fully lazy value path: returns (loss, num_valid) device scalars.

    `loss` is already guarded (0.0 when num_valid == 0); callers that need the
    PyTorch `None` contract can inspect `num_valid` (see `opacity_loss`).
    """
    has_fine = 'opacity_instance_fine' in inputs

    n = batch['valid_mask'].size
    r = -(-n // LANES)                                   # rows of 128 rays
    tile = _round_up(min(tile_max, _round_up(r, SUBLANE_ALIGN)), SUBLANE_ALIGN)
    num_tiles = -(-r // tile)
    cores = _tensorcores_per_chip()
    ncores = cores if num_tiles >= cores else 1
    num_tiles = _round_up(num_tiles, ncores)             # guarantee TC split
    r_pad = num_tiles * tile
    tpc = num_tiles // ncores

    planes = [_pack_plane(inputs['opacity_instance_coarse'], r_pad,
                          jnp.float32)]
    if has_fine:
        planes.append(_pack_plane(inputs['opacity_instance_fine'], r_pad,
                                  jnp.float32))
    planes += [
        _pack_plane(batch['instance_mask'], r_pad, jnp.int8),
        _pack_plane(batch['instance_mask_weight'], r_pad, jnp.bfloat16),
        _pack_plane(batch['valid_mask'], r_pad, jnp.int8),
    ]

    sums = _partial_sums(planes, has_fine, tile, ncores, tpc)
    num = sums[0] + (sums[2] if has_fine else 0.0)
    den = sums[1]
    loss = jnp.where(den > 0,
                     jnp.float32(coef) * num / jnp.maximum(den, 1.0),
                     jnp.float32(0.0))
    return loss, den


def opacity_loss(inputs, batch, coef=1.0, tile_max=TILE_MAX):
    """JAX/Pallas equivalent of OpacityLoss.forward.

    Returns None when the valid mask is empty (matching the PyTorch module).
    The None decision uses one tiny scalar read of the kernel's own valid
    count -- the kernel is already dispatched by then and no extra pass over
    valid_mask is made (no pre-dispatch host sync).
    """
    loss, den = opacity_loss_value(inputs, batch, jnp.float32(coef),
                                   tile_max=tile_max)
    if float(den) == 0.0:
        return None
    return loss


def _reference(inputs, batch, coef, bf16_weight=False):
    """Pure-JAX (eager) reference of OpacityLoss.forward."""
    valid = batch['valid_mask'].reshape(-1)
    if int(jnp.sum(valid)) == 0:
        return None
    vb = valid.astype(bool)
    imask = batch['instance_mask'].reshape(-1)[vb].astype(jnp.float32)
    iw = batch['instance_mask_weight'].reshape(-1)[vb]
    if bf16_weight:                    # mirrors the kernel's bf16 streaming
        iw = iw.astype(jnp.bfloat16)
    iw = iw.astype(jnp.float32)
    opc = jnp.clip(inputs['opacity_instance_coarse'].reshape(-1)[vb], 0.0, 1.0)
    loss = jnp.mean((opc - imask) ** 2 * iw)
    if 'opacity_instance_fine' in inputs:
        opf = jnp.clip(inputs['opacity_instance_fine'].reshape(-1)[vb],
                       0.0, 1.0)
        loss = loss + jnp.mean((opf - imask) ** 2 * iw)
    return coef * loss


if __name__ == "__main__":
    key = jax.random.PRNGKey(0)
    ks = jax.random.split(key, 5)

    B, NR = 2, 8200                  # 16400 rays -> 129 rows of 128 (ragged)
    N = B * NR
    coef = 10.0

    batch = {
        'valid_mask': jax.random.uniform(ks[0], (B, NR)) > 0.1,
        'instance_mask': jax.random.uniform(ks[1], (B, NR)) > 0.5,
        'instance_mask_weight': jax.random.uniform(
            ks[2], (B, NR), jnp.float32, 0.5, 2.0),
    }
    inputs_cf = {
        'opacity_instance_coarse': jax.random.uniform(
            ks[3], (N,), jnp.float32, -0.2, 1.2),
        'opacity_instance_fine': jax.random.uniform(
            ks[4], (N,), jnp.float32, -0.2, 1.2),
    }
    inputs_c = {
        'opacity_instance_coarse': inputs_cf['opacity_instance_coarse'],
    }

    for inp in (inputs_cf, inputs_c):
        ref_exact = jax.block_until_ready(_reference(inp, batch, coef))
        ref_match = jax.block_until_ready(
            _reference(inp, batch, coef, bf16_weight=True))
        # Default large tile, and a small tile forcing a multi-step grid plus
        # the 2-way "parallel" core split with per-core accumulation.
        for tile_max in (TILE_MAX, 32):
            got = opacity_loss(inp, batch, coef=coef, tile_max=tile_max)
            got = jax.block_until_ready(got)
            # Tight check against a reference using the same bf16 weights.
            assert jnp.allclose(got, ref_match, rtol=1e-5, atol=1e-6), \
                (tile_max, got, ref_match)
            # Loose check against exact f32-weight PyTorch semantics (bf16
            # weight streaming rounds each weight by <= ~0.2%).
            assert jnp.allclose(got, ref_exact, rtol=5e-3, atol=1e-5), \
                (tile_max, got, ref_exact)

    # Empty valid mask -> None (matches the PyTorch module).
    empty_batch = dict(batch)
    empty_batch['valid_mask'] = jnp.zeros((B, NR), dtype=bool)
    assert opacity_loss(inputs_c, empty_batch, coef=coef) is None

    print("KERNEL_OK")
</pallas_src>

<mosaic_0001>
module attributes {stable_mosaic.version = 11 : i64} {
  func.func @_opacity_kernel(%arg0: i32, %arg1: i32, %arg2: memref<160x128xf32, #tpu.memory_space<vmem>>, %arg3: memref<160x128xf32, #tpu.memory_space<vmem>>, %arg4: memref<160x128xi8, #tpu.memory_space<vmem>>, %arg5: memref<160x128xbf16, #tpu.memory_space<vmem>>, %arg6: memref<160x128xi8, #tpu.memory_space<vmem>>, %arg7: memref<1x3x8x128xf32, #tpu.memory_space<vmem>>) attributes {dimension_semantics = [#tpu.dimension_semantics<parallel>, #tpu.dimension_semantics<arbitrary>], iteration_bounds = array<i64: 1, 1>, scalar_prefetch = 0 : i64, scratch_operands = 0 : i64, tpu.core_type = #tpu.core_type<tc>, window_params = [{transform_indices = @transform_0, window_bounds = array<i64: 160, 128>}, {transform_indices = @transform_1, window_bounds = array<i64: 160, 128>}, {transform_indices = @transform_2, window_bounds = array<i64: 160, 128>}, {transform_indices = @transform_3, window_bounds = array<i64: 160, 128>}, {transform_indices = @transform_4, window_bounds = array<i64: 160, 128>}, {transform_indices = @transform_5, window_bounds = array<i64: 1, 3, 8, 128>}]} {
    %c0_i32 = arith.constant 0 : i32
    %0 = arith.cmpi eq, %arg1, %c0_i32 : i32
    %1 = arith.extui %0 : i1 to i32
    %c0_i32_0 = arith.constant 0 : i32
    %2 = arith.cmpi ne, %1, %c0_i32_0 : i32
    scf.if %2 {
      %cst_38 = arith.constant 0.000000e+00 : f32
      %50 = vector.broadcast %cst_38 : f32 to vector<1x3x8x128xf32>
      %c0_39 = arith.constant 0 : index
      %c0_40 = arith.constant 0 : index
      %c0_41 = arith.constant 0 : index
      %c0_42 = arith.constant 0 : index
      %51 = vector.load %arg7[%c0_39, %c0_40, %c0_41, %c0_42] : memref<1x3x8x128xf32, #tpu.memory_space<vmem>>, vector<1x3x8x128xf32>
      tpu.vector_store %arg7[%c0_39, %c0_40, %c0_41, %c0_42], %50 {strides = array<i32>} : memref<1x3x8x128xf32, #tpu.memory_space<vmem>>, vector<1x3x8x128xf32>,
    } else {
    }
    %c0 = arith.constant 0 : index
    %c0_1 = arith.constant 0 : index
    %3 = vector.load %arg6[%c0, %c0_1] : memref<160x128xi8, #tpu.memory_space<vmem>>, vector<160x128xi8>
    %4 = arith.sitofp %3 : vector<160x128xi8> to vector<160x128xf32>
    %c0_2 = arith.constant 0 : index
    %c0_3 = arith.constant 0 : index
    %5 = vector.load %arg4[%c0_2, %c0_3] : memref<160x128xi8, #tpu.memory_space<vmem>>, vector<160x128xi8>
    %6 = arith.sitofp %5 : vector<160x128xi8> to vector<160x128xf32>
    %c0_4 = arith.constant 0 : index
    %c0_5 = arith.constant 0 : index
    %7 = vector.load %arg5[%c0_4, %c0_5] : memref<160x128xbf16, #tpu.memory_space<vmem>>, vector<160x128xbf16>
    %8 = arith.extf %7 : vector<160x128xbf16> to vector<160x128xf32>
    %9 = arith.mulf %4, %8 : vector<160x128xf32>
    %c0_6 = arith.constant 0 : index
    %c0_7 = arith.constant 0 : index
    %10 = vector.load %arg2[%c0_6, %c0_7] : memref<160x128xf32, #tpu.memory_space<vmem>>, vector<160x128xf32>
    %cst = arith.constant 0.000000e+00 : f32
    %cst_8 = arith.constant 1.000000e+00 : f32
    %11 = vector.broadcast %cst : f32 to vector<160x128xf32>
    %12 = arith.maximumf %11, %10 : vector<160x128xf32>
    %13 = vector.broadcast %cst_8 : f32 to vector<160x128xf32>
    %14 = arith.minimumf %13, %12 : vector<160x128xf32>
    %15 = arith.subf %14, %6 : vector<160x128xf32>
    %c0_9 = arith.constant 0 : index
    %c0_10 = arith.constant 0 : index
    %c0_11 = arith.constant 0 : index
    %c0_12 = arith.constant 0 : index
    %16 = vector.load %arg7[%c0_9, %c0_10, %c0_11, %c0_12] : memref<1x3x8x128xf32, #tpu.memory_space<vmem>>, vector<1x1x8x128xf32>
    %17 = vector.shape_cast %16 : vector<1x1x8x128xf32> to vector<8x128xf32>
    %18 = arith.mulf %15, %15 : vector<160x128xf32>
    %19 = arith.mulf %18, %9 : vector<160x128xf32>
    %20 = vector.shape_cast %19 : vector<160x128xf32> to vector<20x8x128xf32>
    %cst_13 = arith.constant dense<0.000000e+00> : vector<8x128xf32>
    %21 = vector.multi_reduction <add>, %20, %cst_13 [0] : vector<20x8x128xf32> to vector<8x128xf32>
    %22 = arith.addf %17, %21 : vector<8x128xf32>
    %c0_14 = arith.constant 0 : index
    %c0_15 = arith.constant 0 : index
    %c0_16 = arith.constant 0 : index
    %c0_17 = arith.constant 0 : index
    %23 = vector.load %arg7[%c0_14, %c0_15, %c0_16, %c0_17] : memref<1x3x8x128xf32, #tpu.memory_space<vmem>>, vector<1x1x8x128xf32>
    %24 = vector.shape_cast %23 : vector<1x1x8x128xf32> to vector<8x128xf32>
    %25 = vector.shape_cast %22 : vector<8x128xf32> to vector<1x1x8x128xf32>
    tpu.vector_store %arg7[%c0_14, %c0_15, %c0_16, %c0_17], %25 {strides = array<i32>} : memref<1x3x8x128xf32, #tpu.memory_space<vmem>>, vector<1x1x8x128xf32>,
    %c0_18 = arith.constant 0 : index
    %c1 = arith.constant 1 : index
    %c0_19 = arith.constant 0 : index
    %c0_20 = arith.constant 0 : index
    %26 = vector.load %arg7[%c0_18, %c1, %c0_19, %c0_20] : memref<1x3x8x128xf32, #tpu.memory_space<vmem>>, vector<1x1x8x128xf32>
    %27 = vector.shape_cast %26 : vector<1x1x8x128xf32> to vector<8x128xf32>
    %28 = vector.shape_cast %4 : vector<160x128xf32> to vector<20x8x128xf32>
    %cst_21 = arith.constant dense<0.000000e+00> : vector<8x128xf32>
    %29 = vector.multi_reduction <add>, %28, %cst_21 [0] : vector<20x8x128xf32> to vector<8x128xf32>
    %30 = arith.addf %27, %29 : vector<8x128xf32>
    %c0_22 = arith.constant 0 : index
    %c1_23 = arith.constant 1 : index
    %c0_24 = arith.constant 0 : index
    %c0_25 = arith.constant 0 : index
    %31 = vector.load %arg7[%c0_22, %c1_23, %c0_24, %c0_25] : memref<1x3x8x128xf32, #tpu.memory_space<vmem>>, vector<1x1x8x128xf32>
    %32 = vector.shape_cast %31 : vector<1x1x8x128xf32> to vector<8x128xf32>
    %33 = vector.shape_cast %30 : vector<8x128xf32> to vector<1x1x8x128xf32>
    tpu.vector_store %arg7[%c0_22, %c1_23, %c0_24, %c0_25], %33 {strides = array<i32>} : memref<1x3x8x128xf32, #tpu.memory_space<vmem>>, vector<1x1x8x128xf32>,
    %c0_26 = arith.constant 0 : index
    %c0_27 = arith.constant 0 : index
    %34 = vector.load %arg3[%c0_26, %c0_27] : memref<160x128xf32, #tpu.memory_space<vmem>>, vector<160x128xf32>
    %cst_28 = arith.constant 0.000000e+00 : f32
    %cst_29 = arith.constant 1.000000e+00 : f32
    %35 = vector.broadcast %cst_28 : f32 to vector<160x128xf32>
    %36 = arith.maximumf %35, %34 : vector<160x128xf32>
    %37 = vector.broadcast %cst_29 : f32 to vector<160x128xf32>
    %38 = arith.minimumf %37, %36 : vector<160x128xf32>
    %39 = arith.subf %38, %6 : vector<160x128xf32>
    %c0_30 = arith.constant 0 : index
    %c2 = arith.constant 2 : index
    %c0_31 = arith.constant 0 : index
    %c0_32 = arith.constant 0 : index
    %40 = vector.load %arg7[%c0_30, %c2, %c0_31, %c0_32] : memref<1x3x8x128xf32, #tpu.memory_space<vmem>>, vector<1x1x8x128xf32>
    %41 = vector.shape_cast %40 : vector<1x1x8x128xf32> to vector<8x128xf32>
    %42 = arith.mulf %39, %39 : vector<160x128xf32>
    %43 = arith.mulf %42, %9 : vector<160x128xf32>
    %44 = vector.shape_cast %43 : vector<160x128xf32> to vector<20x8x128xf32>
    %cst_33 = arith.constant dense<0.000000e+00> : vector<8x128xf32>
    %45 = vector.multi_reduction <add>, %44, %cst_33 [0] : vector<20x8x128xf32> to vector<8x128xf32>
    %46 = arith.addf %41, %45 : vector<8x128xf32>
    %c0_34 = arith.constant 0 : index
    %c2_35 = arith.constant 2 : index
    %c0_36 = arith.constant 0 : index
    %c0_37 = arith.constant 0 : index
    %47 = vector.load %arg7[%c0_34, %c2_35, %c0_36, %c0_37] : memref<1x3x8x128xf32, #tpu.memory_space<vmem>>, vector<1x1x8x128xf32>
    %48 = vector.shape_cast %47 : vector<1x1x8x128xf32> to vector<8x128xf32>
    %49 = vector.shape_cast %46 : vector<8x128xf32> to vector<1x1x8x128xf32>
    tpu.vector_store %arg7[%c0_34, %c2_35, %c0_36, %c0_37], %49 {strides = array<i32>} : memref<1x3x8x128xf32, #tpu.memory_space<vmem>>, vector<1x1x8x128xf32>,
    return
  }
  func.func @transform_0(%arg0: i32, %arg1: i32) -> (i32, i32) {
    %c1_i32 = arith.constant 1 : i32
    %0 = arith.muli %arg0, %c1_i32 : i32
    %1 = arith.addi %0, %arg1 : i32
    %c0_i32 = arith.constant 0 : i32
    %c0_i32_0 = arith.constant 0 : i32
    return %1, %c0_i32 : i32, i32
  }
  func.func @transform_1(%arg0: i32, %arg1: i32) -> (i32, i32) {
    %c1_i32 = arith.constant 1 : i32
    %0 = arith.muli %arg0, %c1_i32 : i32
    %1 = arith.addi %0, %arg1 : i32
    %c0_i32 = arith.constant 0 : i32
    %c0_i32_0 = arith.constant 0 : i32
    return %1, %c0_i32 : i32, i32
  }
  func.func @transform_2(%arg0: i32, %arg1: i32) -> (i32, i32) {
    %c1_i32 = arith.constant 1 : i32
    %0 = arith.muli %arg0, %c1_i32 : i32
    %1 = arith.addi %0, %arg1 : i32
    %c0_i32 = arith.constant 0 : i32
    %c0_i32_0 = arith.constant 0 : i32
    return %1, %c0_i32 : i32, i32
  }
  func.func @transform_3(%arg0: i32, %arg1: i32) -> (i32, i32) {
    %c1_i32 = arith.constant 1 : i32
    %0 = arith.muli %arg0, %c1_i32 : i32
    %1 = arith.addi %0, %arg1 : i32
    %c0_i32 = arith.constant 0 : i32
    %c0_i32_0 = arith.constant 0 : i32
    return %1, %c0_i32 : i32, i32
  }
  func.func @transform_4(%arg0: i32, %arg1: i32) -> (i32, i32) {
    %c1_i32 = arith.constant 1 : i32
    %0 = arith.muli %arg0, %c1_i32 : i32
    %1 = arith.addi %0, %arg1 : i32
    %c0_i32 = arith.constant 0 : i32
    %c0_i32_0 = arith.constant 0 : i32
    return %1, %c0_i32 : i32, i32
  }
  func.func @transform_5(%arg0: i32, %arg1: i32) -> (i32, i32, i32, i32) {
    %c0_i32 = arith.constant 0 : i32
    %c0_i32_0 = arith.constant 0 : i32
    %c0_i32_1 = arith.constant 0 : i32
    %c0_i32_2 = arith.constant 0 : i32
    return %arg0, %c0_i32, %c0_i32_0, %c0_i32_1 : i32, i32, i32, i32
  }
}

</mosaic_0001>

<bundles_post_ra>
// kernel: opacity_loss_value.1
= control target key start
LH: loop header
LB: loop body
LE: loop exit
PB: predicated region body
PF: predicated region fallthrough
CT: control target
= control target key end

     0   :  { %s1154_s4 = inlined_call_operand.vmem [shape: s8[160,128], index: 4, kind: input, shape index: {}]   ;;  %s1155_s2 = inlined_call_operand.vmem [shape: s8[160,128], index: 2, kind: input, shape index: {}]   ;;  %s1156_s0 = inlined_call_operand.vmem [shape: f32[160,128], index: 0, kind: input, shape index: {}]   ;;  %s1157_s3 = inlined_call_operand.vmem [shape: bf16[160,128], index: 3, kind: input, shape index: {}]   ;;  %s1158_s1 = inlined_call_operand.vmem [shape: f32[160,128], index: 1, kind: input, shape index: {}]   ;;  %s1159_s5 = inlined_call_operand.vmem [shape: f32[1,3,8,128], index: 5, kind: output, shape index: {}]  }
   0x1   :  { %v137_v0 = vld [vmem:[%s1154_s4] sm:$0xff]  ;;  %v138_v1 = vld [vmem:[%s1154_s4 + $0x8] sm:$0xff]  ;;  %v139_v2 = vld [vmem:[%s1154_s4 + $0x10] sm:$0xff] }
   0x2   :  { %v140_v3 = vld [vmem:[%s1154_s4 + $0x18] sm:$0xff]  ;;  %v142_v4 = vunpack.c.0.s8 %v137_v0  ;;  %v143_v5 = vunpack.c.1.s8 %v137_v0  ;;  %v144_v6 = vunpack.c.2.s8 %v137_v0  ;;  %v141_v7 = vld [vmem:[%s1154_s4 + $0x20] sm:$0xff]  ;;  %v145_v8 = vunpack.c.3.s8 %v137_v0  ;;  %v183_v41 = vld [vmem:[%s1155_s2 + $0x8] sm:$0xff] }
   0x3   :  { %v146_v9 = vunpack.c.0.s8 %v138_v1  ;;  %v147_v10 = vunpack.c.1.s8 %v138_v1  ;;  %v148_v11 = vunpack.c.2.s8 %v138_v1  ;;  %v149_v12 = vunpack.c.3.s8 %v138_v1  ;;  %v182_v36 = vld [vmem:[%s1155_s2] sm:$0xff]  ;;  %v184_v46 = vld [vmem:[%s1155_s2 + $0x10] sm:$0xff]  ;;  %v185_v48 = vld [vmem:[%s1155_s2 + $0x18] sm:$0xff] }
   0x4   :  { %v150_v13 = vunpack.c.0.s8 %v139_v2  ;;  %v151_v14 = vunpack.c.1.s8 %v139_v2  ;;  %v152_v15 = vunpack.c.2.s8 %v139_v2  ;;  %v153_v16 = vunpack.c.3.s8 %v139_v2  ;;  %v186_v52 = vld [vmem:[%s1155_s2 + $0x20] sm:$0xff] }
   0x5   :  { %v154_v17 = vunpack.c.0.s8 %v140_v3  ;;  %v155_v18 = vunpack.c.1.s8 %v140_v3  ;;  %v156_v19 = vunpack.c.2.s8 %v140_v3  ;;  %v157_v20 = vunpack.c.3.s8 %v140_v3 }
   0x6   :  { %v158_v21 = vunpack.c.0.s8 %v141_v7  ;;  %v159_v22 = vunpack.c.1.s8 %v141_v7  ;;  %v160_v23 = vunpack.c.2.s8 %v141_v7  ;;  %v161_v24 = vunpack.c.3.s8 %v141_v7 }
   0x7   :  { %v728_v25 = vcvt.s32.f32 %v142_v4  ;;  %v730_v26 = vcvt.s32.f32 %v143_v5  ;;  %v732_v27 = vcvt.s32.f32 %v144_v6  ;;  %v734_v28 = vcvt.s32.f32 %v145_v8 }
   0x8   :  { %v736_v29 = vcvt.s32.f32 %v146_v9  ;;  %v738_v30 = vcvt.s32.f32 %v147_v10  ;;  %v740_v31 = vcvt.s32.f32 %v148_v11  ;;  %v742_v32 = vcvt.s32.f32 %v149_v12 }
   0x9   :  { %1190 = vst [vmem:[#allocation2_spill] sm:$0xff] %v732_v27  ;;  %v744_v33 = vcvt.s32.f32 %v150_v13  ;;  %v746_v34 = vcvt.s32.f32 %v151_v14  ;;  %v748_v35 = vcvt.s32.f32 %v152_v15  ;;  %v753_v37 = vcvt.s32.f32 %v153_v16 }
   0xa   :  { %v755_v38 = vcvt.s32.f32 %v154_v17  ;;  %v757_v39 = vcvt.s32.f32 %v155_v18  ;;  %v759_v40 = vcvt.s32.f32 %v156_v19  ;;  %v764_v42 = vcvt.s32.f32 %v157_v20  ;;  %v634_v17 = vld [vmem:[%s1157_s3] sm:$0xff]   ;;  %v288_v19 = vld [vmem:[%s1156_s0 + $0x8] sm:$0xff] }
   0xb   :  { %v766_v43 = vcvt.s32.f32 %v158_v21  ;;  %v768_v44 = vcvt.s32.f32 %v159_v22  ;;  %v770_v45 = vcvt.s32.f32 %v160_v23  ;;  %v775_v47 = vcvt.s32.f32 %v161_v24  ;;  %v287_v18 = vld [vmem:[%s1156_s0] sm:$0xff]  ;;  %v673_v24 = vld [vmem:[%s1157_s3 + $0x8] sm:$0xff]  }
   0xc   :  { %1191 = vst [vmem:[#allocation3_spill] sm:$0xff] %v764_v42  ;;  %v187_v49 = vunpack.c.0.s8 %v182_v36  ;;  %v188_v50 = vunpack.c.1.s8 %v182_v36  ;;  %v189_v51 = vunpack.c.2.s8 %v182_v36  ;;  %v190_v53 = vunpack.c.3.s8 %v182_v36  ;;  %v674_v36 = vld [vmem:[%s1157_s3 + $0x10] sm:$0xff]  }
   0xd   :  { %1192 = vst [vmem:[#allocation4_spill] sm:$0xff] %v766_v43  ;;  %1193 = vst [vmem:[#allocation5_spill] sm:$0xff] %v768_v44  ;;  %v191_v54 = vunpack.c.0.s8 %v183_v41  ;;  %v192_v55 = vunpack.c.1.s8 %v183_v41  ;;  %v193_v56 = vunpack.c.2.s8 %v183_v41  ;;  %v194_v57 = vunpack.c.3.s8 %v183_v41 }
   0xe   :  { %1194 = vst [vmem:[#allocation6_spill] sm:$0xff] %v770_v45  ;;  %1195 = vst [vmem:[#allocation7_spill] sm:$0xff] %v775_v47  ;;  %v195_v58 = vunpack.c.0.s8 %v184_v46  ;;  %v196_v59 = vunpack.c.1.s8 %v184_v46  ;;  %v197_v60 = vunpack.c.2.s8 %v184_v46  ;;  %v198_v61 = vunpack.c.3.s8 %v184_v46 }
   0xf   :  { %v199_v62 = vunpack.c.0.s8 %v185_v48  ;;  %v200_v63 = vunpack.c.1.s8 %v185_v48  ;;  %v201_v0 = vunpack.c.2.s8 %v185_v48  ;;  %v202_v1 = vunpack.c.3.s8 %v185_v48 }
  0x10   :  { %v203_v2 = vunpack.c.0.s8 %v186_v52  ;;  %v204_v3 = vunpack.c.1.s8 %v186_v52  ;;  %v205_v4 = vunpack.c.2.s8 %v186_v52  ;;  %v206_v5 = vunpack.c.3.s8 %v186_v52 }
  0x11   :  { %v783_v6 = vcvt.s32.f32 %v187_v49  ;;  %v785_v7 = vcvt.s32.f32 %v188_v50  ;;  %v787_v8 = vcvt.s32.f32 %v189_v51  ;;  %v789_v9 = vcvt.s32.f32 %v190_v53  ;;  %v675_v50 = vld [vmem:[%s1157_s3 + $0x18] sm:$0xff]   ;;  %v289_v51 = vld [vmem:[%s1156_s0 + $0x10] sm:$0xff] }
  0x12   :  { %v791_v10 = vcvt.s32.f32 %v191_v54  ;;  %v793_v11 = vcvt.s32.f32 %v192_v55  ;;  %v795_v12 = vcvt.s32.f32 %v193_v56  ;;  %v797_v13 = vcvt.s32.f32 %v194_v57  ;;  %v676_v54 = vld [vmem:[%s1157_s3 + $0x20] sm:$0xff]   ;;  %v850_v55 = vld [vmem:[%s1157_s3 + $0x28] sm:$0xff]  }
  0x13   :  { %1196 = vst [vmem:[#allocation8_spill] sm:$0xff] %v783_v6  ;;  %1197 = vst [vmem:[#allocation9_spill] sm:$0xff] %v785_v7  ;;  %v799_v14 = vcvt.s32.f32 %v195_v58  ;;  %v801_v15 = vcvt.s32.f32 %v196_v59  ;;  %v803_v16 = vcvt.s32.f32 %v197_v60  ;;  %v814_v20 = vcvt.s32.f32 %v198_v61 }
  0x14   :  { %1198 = vst [vmem:[#allocation10_spill] sm:$0xff] %v789_v9  ;;  %1199 = vst [vmem:[#allocation11_spill] sm:$0xff] %v793_v11  ;;  %v816_v21 = vcvt.s32.f32 %v199_v62  ;;  %v818_v22 = vcvt.s32.f32 %v200_v63  ;;  %v820_v23 = vcvt.s32.f32 %v201_v0  ;;  %v828_v41 = vcvt.s32.f32 %v202_v1  ;;  %v678_v62 = vld [vmem:[%s1157_s3 + $0x30] sm:$0xff]   ;;  %v290_v63 = vld [vmem:[%s1156_s0 + $0x18] sm:$0xff] }
  0x15   :  { %1200 = vst [vmem:[#allocation12_spill] sm:$0xff] %v795_v12  ;;  %1201 = vst [vmem:[#allocation13_spill] sm:$0xff] %v797_v13  ;;  %v830_v46 = vcvt.s32.f32 %v203_v2  ;;  %v832_v48 = vcvt.s32.f32 %v204_v3  ;;  %v834_v49 = vcvt.s32.f32 %v205_v4  ;;  %v842_v52 = vcvt.s32.f32 %v206_v5  ;;  %v679_v3 = vld [vmem:[%s1157_s3 + $0x38] sm:$0xff]   ;;  %v864_v4 = vld [vmem:[%s1157_s3 + $0x40] sm:$0xff]  }
  0x16   :  { %1202 = vst [vmem:[#allocation14_spill] sm:$0xff] %v799_v14  ;;  %1203 = vst [vmem:[#allocation15_spill] sm:$0xff] %v801_v15  ;;  %v635_v53 = vunpack.c.l.bf16 %v634_v17  ;;  %v307_v56 = vmax.f32 %v287_v18, 0.0  ;;  %v308_v57 = vmax.f32 %v288_v19, 0.0  ;;  %v636_v58 = vunpack.c.h.bf16 %v634_v17 }
  0x17   :  { %1204 = vst [vmem:[#allocation16_spill] sm:$0xff] %v803_v16  ;;  %1205 = vst [vmem:[#allocation17_spill] sm:$0xff] %v814_v20  ;;  %v639_v59 = vunpack.c.l.bf16 %v673_v24  ;;  %v640_v60 = vunpack.c.h.bf16 %v673_v24  ;;  %v643_v61 = vunpack.c.l.bf16 %v674_v36  ;;  %v644_v0 = vunpack.c.h.bf16 %v674_v36  ;;  %v871_v36 = vld [vmem:[%s1157_s3 + $0x48] sm:$0xff]  }
  0x18   :  { %1206 = vst [vmem:[#allocation18_spill] sm:$0xff] %v816_v21  ;;  %1207 = vst [vmem:[#allocation19_spill] sm:$0xff] %v818_v22  ;;  %v647_v1 = vunpack.c.l.bf16 %v675_v50  ;;  %v648_v2 = vunpack.c.h.bf16 %v675_v50  ;;  %v309_v5 = vmax.f32 %v289_v51, 0.0  ;;  %v651_v17 = vunpack.c.l.bf16 %v676_v54  ;;  %v291_v50 = vld [vmem:[%s1156_s0 + $0x20] sm:$0xff] }
  0x19   :  { %1208 = vst [vmem:[#allocation20_spill] sm:$0xff] %v820_v23  ;;  %1209 = vst [vmem:[#allocation21_spill] sm:$0xff] %v828_v41  ;;  %v652_v18 = vunpack.c.h.bf16 %v676_v54  ;;  %v655_v19 = vunpack.c.l.bf16 %v850_v55  ;;  %v656_v24 = vunpack.c.h.bf16 %v850_v55  ;;  %v660_v51 = vunpack.c.h.bf16 %v678_v62  ;;  %v292_v55 = vld [vmem:[%s1156_s0 + $0x28] sm:$0xff] }
  0x1a   :  { %1210 = vst [vmem:[#allocation22_spill] sm:$0xff] %v830_v46  ;;  %1211 = vst [vmem:[#allocation23_spill] sm:$0xff] %v832_v48  ;;  %v327_v48 = vmin.f32 %v307_v56, 1.0  ;;  %v328_v46 = vmin.f32 %v308_v57, 1.0  ;;  %v663_v41 = vunpack.c.l.bf16 %v679_v3  ;;  %v664_v54 = vunpack.c.h.bf16 %v679_v3  ;;  %v294_v3 = vld [vmem:[%s1156_s0 + $0x38] sm:$0xff] }
  0x1b   :  { %1212 = vst [vmem:[#allocation24_spill] sm:$0xff] %v834_v49  ;;  %1213 = vst [vmem:[#allocation25_spill] sm:$0xff] %v842_v52  ;;  %v659_v52 = vunpack.c.l.bf16 %v678_v62  ;;  %v310_v49 = vmax.f32 %v290_v63, 0.0  ;;  %v667_v23 = vunpack.c.l.bf16 %v864_v4  ;;  %v668_v22 = vunpack.c.h.bf16 %v864_v4  ;;  %v293_v63 = vld [vmem:[%s1156_s0 + $0x30] sm:$0xff] }
  0x1c   :  { %v671_v21 = vunpack.c.l.bf16 %v871_v36  ;;  %v311_v20 = vmax.f32 %v291_v50, 0.0  ;;  %v329_v16 = vmin.f32 %v309_v5, 1.0  ;;  %v672_v15 = vunpack.c.h.bf16 %v871_v36 }
  0x1d   :  { %v884_v56 = vmul.f32 %v635_v53, %v728_v25  ;;  %v887_v57 = vmul.f32 %v636_v58, %v730_v26  ;;  %v890_v62 = vmul.f32 %v639_v59, %v732_v27  ;;  %v312_v4 = vmax.f32 %v292_v55, 0.0 }
  0x1e   :  { %v330_v5 = vmin.f32 %v310_v49, 1.0  ;;  %v347_v36 = vsub.f32 %v327_v48, %v783_v6  ;;  %v348_v53 = vsub.f32 %v328_v46, %v785_v7  ;;  %v901_v58 = vmul.f32 %v640_v60, %v734_v28  ;;  %v295_v48 = vld [vmem:[%s1156_s0 + $0x40] sm:$0xff] }
  0x1f   :  { %1214 = vst [vmem:[#allocation26_spill] sm:$0xff] %v884_v56  ;;  %1215 = vst [vmem:[#allocation27_spill] sm:$0xff] %v887_v57  ;;  %v904_v59 = vmul.f32 %v643_v61, %v736_v29  ;;  %v907_v50 = vmul.f32 %v644_v0, %v738_v30  ;;  %v910_v27 = vmul.f32 %v647_v1, %v740_v31  ;;  %v313_v46 = vmax.f32 %v293_v63, 0.0 }
  0x20   :  { %1216 = vst [vmem:[#allocation28_spill] sm:$0xff] %v890_v62  ;;  %1217 = vst [vmem:[#allocation29_spill] sm:$0xff] %v901_v58  ;;  %v913_v14 = vmul.f32 %v648_v2, %v742_v32  ;;  %v331_v49 = vmin.f32 %v311_v20, 1.0  ;;  %v349_v60 = vsub.f32 %v329_v16, %v787_v8  ;;  %v920_v61 = vmul.f32 %v651_v17, %v744_v33  ;;  %v296_v2 = vld [vmem:[%s1156_s0 + $0x48] sm:$0xff] }
  0x21   :  { %1218 = vst [vmem:[#allocation30_spill] sm:$0xff] %v904_v59  ;;  %v923_v0 = vmul.f32 %v652_v18, %v746_v34  ;;  %v926_v1 = vmul.f32 %v655_v19, %v748_v35  ;;  %v314_v55 = vmax.f32 %v294_v3, 0.0  ;;  %v332_v7 = vmin.f32 %v312_v4, 1.0  ;;  %v297_v4 = vld [vmem:[%s1156_s0 + $0x50] sm:$0xff] }
  0x22   :  { %v350_v63 = vsub.f32 %v330_v5, %v789_v9  ;;  %v368_v20 = vmul.f32 %v347_v36, %v347_v36  ;;  %v369_v6 = vmul.f32 %v348_v53, %v348_v53  ;;  %v933_v16 = vmul.f32 %v656_v24, %v753_v37 }
  0x23   :  { %v936_v17 = vmul.f32 %v659_v52, %v755_v38  ;;  %v939_v18 = vmul.f32 %v660_v51, %v757_v39  ;;  %v315_v19 = vmax.f32 %v295_v48, 0.0  ;;  %v942_v3 = vmul.f32 %v663_v41, %v759_v40  ;;  %v298_v41 = vld [vmem:[%s1156_s0 + $0x58] sm:$0xff]  ;;  %v299_v48 = vld [vmem:[%s1156_s0 + $0x60] sm:$0xff] }
  0x24   :  { %v333_v5 = vmin.f32 %v313_v46, 1.0  ;;  %v351_v36 = vsub.f32 %v331_v49, %v791_v10  ;;  %v370_v53 = vmul.f32 %v349_v60, %v349_v60  ;;  %v949_v24 = vmul.f32 %v664_v54, %v764_v42 }
  0x25   :  { %v952_v52 = vmul.f32 %v667_v23, %v766_v43  ;;  %v316_v51 = vmax.f32 %v296_v2, 0.0  ;;  %v334_v9 = vmin.f32 %v314_v55, 1.0  ;;  %v352_v46 = vsub.f32 %v332_v7, %v793_v11  ;;  %v300_v7 = vld [vmem:[%s1156_s0 + $0x68] sm:$0xff] }
  0x26   :  { %v371_v49 = vmul.f32 %v350_v63, %v350_v63  ;;  %v388_v60 = vmul.f32 %v368_v20, %v884_v56  ;;  %v389_v54 = vmul.f32 %v369_v6, %v887_v57  ;;  %v964_v23 = vmul.f32 %v668_v22, %v768_v44  ;;  %v301_v63 = vld [vmem:[%s1156_s0 + $0x70] sm:$0xff] }
  0x27   :  { %v967_v55 = vmul.f32 %v671_v21, %v770_v45  ;;  %v317_v2 = vmax.f32 %v297_v4, 0.0  ;;  %v335_v43 = vmin.f32 %v315_v19, 1.0  ;;  %v970_v42 = vmul.f32 %v672_v15, %v775_v47  ;;  %v302_v15 = vld [vmem:[%s1156_s0 + $0x78] sm:$0xff]  ;;  %v303_v47 = vld [vmem:[%s1156_s0 + $0x80] sm:$0xff] }
  0x28   :  { %v353_v6 = vsub.f32 %v333_v5, %v795_v12  ;;  %v372_v22 = vmul.f32 %v351_v36, %v351_v36  ;;  %v390_v20 = vmul.f32 %v370_v53, %v890_v62  ;;  %v318_v21 = vmax.f32 %v298_v41, 0.0  ;;  %v305_v62 = vld [vmem:[%s1156_s0 + $0x90] sm:$0xff] }
  0x29   :  { %1219 = vst [vmem:[#allocation31_spill] sm:$0xff] %v970_v42  ;;  %v319_v45 = vmax.f32 %v299_v48, 0.0  ;;  %v336_v4 = vmin.f32 %v316_v51, 1.0  ;;  %v354_v19 = vsub.f32 %v334_v9, %v797_v13  ;;  %v373_v44 = vmul.f32 %v352_v46, %v352_v46  ;;  %v1220_v48 = vld [vmem:[#allocation14_spill] sm:$0xff]  ;;  %v304_v13 = vld [vmem:[%s1156_s0 + $0x88] sm:$0xff] }
  0x2a   :  { %v391_v42 = vmul.f32 %v371_v49, %v901_v58  ;;  %v408_v5 = vadd.f32 %v389_v54, %v388_v60  ;;  %v431_v36 = vadd.f32 %v730_v26, %v728_v25  ;;  %v320_v53 = vmax.f32 %v300_v7, 0.0  ;;  %v1221_v54 = vld [vmem:[#allocation2_spill] sm:$0xff] }
  0x2b   :  { %v321_v41 = vmax.f32 %v301_v63, 0.0  ;;  %v337_v51 = vmin.f32 %v317_v2, 1.0  ;;  %v355_v9 = vsub.f32 %v335_v43, %v1220_v48  ;;  %v374_v46 = vmul.f32 %v353_v6, %v353_v6  ;;  %v1222_v2 = vld [vmem:[#allocation15_spill] sm:$0xff]  ;;  %v306_v43 = vld [vmem:[%s1156_s0 + $0x98] sm:$0xff] }
  0x2c   :  { %v392_v49 = vmul.f32 %v372_v22, %v904_v59  ;;  %v409_v60 = vadd.f32 %v408_v5, %v390_v20  ;;  %v432_v58 = vadd.f32 %v431_v36, %v1221_v54  ;;  %v322_v25 = vmax.f32 %v302_v15, 0.0  ;;  %v1223_v5 = vld [vmem:[#allocation16_spill] sm:$0xff] }
  0x2d   :  { %v323_v26 = vmax.f32 %v303_v47, 0.0  ;;  %v338_v7 = vmin.f32 %v318_v21, 1.0  ;;  %v356_v63 = vsub.f32 %v336_v4, %v1222_v2  ;;  %v375_v48 = vmul.f32 %v354_v19, %v354_v19  ;;  %v1224_v19 = vld [vmem:[#allocation17_spill] sm:$0xff] }
  0x2e   :  { %v393_v12 = vmul.f32 %v373_v44, %v907_v50  ;;  %v410_v57 = vadd.f32 %v409_v60, %v391_v42  ;;  %v433_v6 = vadd.f32 %v432_v58, %v734_v28  ;;  %v324_v56 = vmax.f32 %v304_v13, 0.0  ;;  %v1227_v60 = vld [vmem:[#allocation20_spill] sm:$0xff] }
  0x2f   :  { %v325_v22 = vmax.f32 %v305_v62, 0.0  ;;  %v339_v20 = vmin.f32 %v319_v45, 1.0  ;;  %v357_v36 = vsub.f32 %v337_v51, %v1223_v5  ;;  %v376_v15 = vmul.f32 %v355_v9, %v355_v9  ;;  %v1225_v51 = vld [vmem:[#allocation18_spill] sm:$0xff] }
  0x30   :  { %v394_v47 = vmul.f32 %v374_v46, %v910_v27  ;;  %v411_v21 = vadd.f32 %v410_v57, %v392_v49  ;;  %v434_v4 = vadd.f32 %v433_v6, %v736_v29  ;;  %v326_v54 = vmax.f32 %v306_v43, 0.0  ;;  %v1226_v49 = vld [vmem:[#allocation19_spill] sm:$0xff]  ;;  %v454_v43 = vld [vmem:[%s1158_s1 + $0x10] sm:$0xff]  ;;  %v1228_v6 = vld [vmem:[#allocation21_spill] sm:$0xff] }
  0x31   :  { %v340_v2 = vmin.f32 %v320_v53, 1.0  ;;  %v341_v59 = vmin.f32 %v321_v41, 1.0  ;;  %v358_v11 = vsub.f32 %v338_v7, %v1224_v19  ;;  %v377_v44 = vmul.f32 %v356_v63, %v356_v63  ;;  %v452_v41 = vld [vmem:[%s1158_s1] sm:$0xff] }
  0x32   :  { %v395_v42 = vmul.f32 %v375_v48, %v913_v14  ;;  %v412_v28 = vadd.f32 %v411_v21, %v393_v12  ;;  %v435_v13 = vadd.f32 %v434_v4, %v738_v30  ;;  %v342_v45 = vmin.f32 %v322_v25, 1.0  ;;  %v453_v12 = vld [vmem:[%s1158_s1 + $0x8] sm:$0xff] }
  0x33   :  { %v343_v62 = vmin.f32 %v323_v26, 1.0  ;;  %v344_v58 = vmin.f32 %v324_v56, 1.0  ;;  %v359_v9 = vsub.f32 %v339_v20, %v1225_v51  ;;  %v378_v46 = vmul.f32 %v357_v36, %v357_v36  ;;  %v1229_v36 = vld [vmem:[#allocation22_spill] sm:$0xff]  ;;  %v1230_v4 = vld [vmem:[#allocation23_spill] sm:$0xff] }
  0x34   :  { %v396_v57 = vmul.f32 %v376_v15, %v920_v61  ;;  %v413_v29 = vadd.f32 %v412_v28, %v394_v47  ;;  %v436_v53 = vadd.f32 %v435_v13, %v740_v31  ;;  %v345_v30 = vmin.f32 %v325_v22, 1.0  ;;  %v1232_v28 = vld [vmem:[#allocation25_spill] sm:$0xff] }
  0x35   :  { %v346_v48 = vmin.f32 %v326_v54, 1.0  ;;  %v360_v56 = vsub.f32 %v340_v2, %v1226_v49  ;;  %v361_v25 = vsub.f32 %v341_v59, %v1227_v60  ;;  %v379_v26 = vmul.f32 %v358_v11, %v358_v11 }
  0x36   :  { %v397_v7 = vmul.f32 %v377_v44, %v923_v0  ;;  %v414_v63 = vadd.f32 %v413_v29, %v395_v42  ;;  %v437_v31 = vadd.f32 %v436_v53, %v742_v32  ;;  %v362_v20 = vsub.f32 %v342_v45, %v1228_v6  ;;  %v455_v32 = vld [vmem:[%s1158_s1 + $0x18] sm:$0xff]  ;;  %v1231_v44 = vld [vmem:[#allocation24_spill] sm:$0xff] }
  0x37   :  { %v363_v15 = vsub.f32 %v343_v62, %v1229_v36  ;;  %v472_v22 = vmax.f32 %v452_v41, 0.0  ;;  %v473_v47 = vmax.f32 %v453_v12, 0.0  ;;  %v380_v21 = vmul.f32 %v359_v9, %v359_v9 }
  0x38   :  { %v398_v2 = vmul.f32 %v378_v46, %v926_v1  ;;  %v415_v59 = vadd.f32 %v414_v63, %v396_v57  ;;  %v438_v11 = vadd.f32 %v437_v31, %v744_v33  ;;  %v364_v54 = vsub.f32 %v344_v58, %v1230_v4  ;;  %v456_v33 = vld [vmem:[%s1158_s1 + $0x20] sm:$0xff] }
  0x39   :  { %v365_v42 = vsub.f32 %v345_v30, %v1231_v44  ;;  %v366_v13 = vsub.f32 %v346_v48, %v1232_v28  ;;  %v474_v45 = vmax.f32 %v454_v43, 0.0  ;;  %v381_v62 = vmul.f32 %v360_v56, %v360_v56  ;;  %v457_v56 = vld [vmem:[%s1158_s1 + $0x28] sm:$0xff] }
  0x3a   :  { %v399_v29 = vmul.f32 %v379_v26, %v933_v16  ;;  %v416_v9 = vadd.f32 %v415_v59, %v397_v7  ;;  %v439_v46 = vadd.f32 %v438_v11, %v746_v34  ;;  %v382_v57 = vmul.f32 %v361_v25, %v361_v25  ;;  %v1234_v11 = vld [vmem:[#allocation9_spill] sm:$0xff] }
  0x3b   :  { %v475_v53 = vmax.f32 %v455_v32, 0.0  ;;  %v492_v41 = vmin.f32 %v472_v22, 1.0  ;;  %v493_v12 = vmin.f32 %v473_v47, 1.0  ;;  %v383_v58 = vmul.f32 %v362_v20, %v362_v20  ;;  %v458_v20 = vld [vmem:[%s1158_s1 + $0x30] sm:$0xff] }
  0x3c   :  { %v400_v30 = vmul.f32 %v380_v21, %v936_v17  ;;  %v417_v63 = vadd.f32 %v416_v9, %v398_v2  ;;  %v440_v48 = vadd.f32 %v439_v46, %v748_v35  ;;  %v384_v26 = vmul.f32 %v363_v15, %v363_v15  ;;  %v459_v35 = vld [vmem:[%s1158_s1 + $0x38] sm:$0xff]  ;;  %v1233_v15 = vld [vmem:[#allocation8_spill] sm:$0xff] }
  0x3d   :  { %v385_v34 = vmul.f32 %v364_v54, %v364_v54  ;;  %v476_v7 = vmax.f32 %v456_v33, 0.0  ;;  %v494_v31 = vmin.f32 %v474_v45, 1.0  ;;  %v386_v43 = vmul.f32 %v365_v42, %v365_v42 }
  0x3e   :  { %v401_v25 = vmul.f32 %v381_v62, %v939_v18  ;;  %v418_v59 = vadd.f32 %v417_v63, %v399_v29  ;;  %v441_v22 = vadd.f32 %v440_v48, %v753_v37  ;;  %v477_v47 = vmax.f32 %v457_v56, 0.0 }
  0x3f   :  { %v495_v21 = vmin.f32 %v475_v53, 1.0  ;;  %v512_v2 = vsub.f32 %v492_v41, %v1233_v15  ;;  %v513_v32 = vsub.f32 %v493_v12, %v1234_v11  ;;  %v387_v54 = vmul.f32 %v366_v13, %v366_v13  ;;  %v460_v13 = vld [vmem:[%s1158_s1 + $0x40] sm:$0xff] }
  0x40   :  { %v402_v42 = vmul.f32 %v382_v57, %v942_v3  ;;  %v419_v45 = vadd.f32 %v418_v59, %v400_v30  ;;  %v442_v37 = vadd.f32 %v441_v22, %v755_v38  ;;  %v403_v62 = vmul.f32 %v383_v58, %v949_v24  ;;  %v461_v38 = vld [vmem:[%s1158_s1 + $0x48] sm:$0xff]  ;;  %v1235_v12 = vld [vmem:[#allocation10_spill] sm:$0xff] }
  0x41   :  { %v478_v29 = vmax.f32 %v458_v20, 0.0  ;;  %v496_v9 = vmin.f32 %v476_v7, 1.0  ;;  %v514_v46 = vsub.f32 %v494_v31, %v787_v8  ;;  %v404_v33 = vmul.f32 %v384_v26, %v952_v52  ;;  %v462_v7 = vld [vmem:[%s1158_s1 + $0x50] sm:$0xff]  ;;  %v1238_v11 = vld [vmem:[#allocation26_spill] sm:$0xff] }
  0x42   :  { %v420_v63 = vadd.f32 %v419_v45, %v401_v25  ;;  %v443_v53 = vadd.f32 %v442_v37, %v757_v39  ;;  %v479_v41 = vmax.f32 %v459_v35, 0.0  ;;  %v497_v57 = vmin.f32 %v477_v47, 1.0  ;;  %v1236_v35 = vld [vmem:[#allocation3_spill] sm:$0xff] }
  0x43   :  { %v515_v58 = vsub.f32 %v495_v21, %v1235_v12  ;;  %v534_v30 = vmul.f32 %v512_v2, %v512_v2  ;;  %v535_v48 = vmul.f32 %v513_v32, %v513_v32  ;;  %v405_v8 = vmul.f32 %v385_v34, %v964_v23  ;;  %v463_v34 = vld [vmem:[%s1158_s1 + $0x58] sm:$0xff]  ;;  %v1240_v37 = vld [vmem:[#allocation31_spill] sm:$0xff] }
  0x44   :  { %v406_v56 = vmul.f32 %v386_v43, %v967_v55  ;;  %v421_v26 = vadd.f32 %v420_v63, %v402_v42  ;;  %v444_v39 = vadd.f32 %v443_v53, %v759_v40  ;;  %v480_v31 = vmax.f32 %v460_v13, 0.0  ;;  %v1237_v43 = vld [vmem:[#allocation11_spill] sm:$0xff]  ;;  %v464_v63 = vld [vmem:[%s1158_s1 + $0x60] sm:$0xff]  ;;  %v1242_v13 = vld [vmem:[#allocation12_spill] sm:$0xff] }
  0x45   :  { %v498_v25 = vmin.f32 %v478_v29, 1.0  ;;  %v516_v59 = vsub.f32 %v496_v9, %v791_v10  ;;  %v536_v22 = vmul.f32 %v514_v46, %v514_v46  ;;  %v481_v21 = vmax.f32 %v461_v38, 0.0  ;;  %v1239_v42 = vld [vmem:[#allocation27_spill] sm:$0xff]  ;;  %v1241_v9 = vld [vmem:[#allocation4_spill] sm:$0xff] }
  0x46   :  { %v422_v20 = vadd.f32 %v421_v26, %v403_v62  ;;  %v445_v47 = vadd.f32 %v444_v39, %v1236_v35  ;;  %v499_v15 = vmin.f32 %v479_v41, 1.0  ;;  %v517_v40 = vsub.f32 %v497_v57, %v1237_v43  ;;  %v1243_v57 = vld [vmem:[#allocation28_spill] sm:$0xff]  ;;  %v1246_v35 = vld [vmem:[#allocation29_spill] sm:$0xff] }
  0x47   :  { %v537_v2 = vmul.f32 %v515_v58, %v515_v58  ;;  %v554_v32 = vmul.f32 %v534_v30, %v1238_v11  ;;  %v555_v45 = vmul.f32 %v535_v48, %v1239_v42  ;;  %v407_v29 = vmul.f32 %v387_v54, %v1240_v37  ;;  %v1244_v30 = vld [vmem:[#allocation5_spill] sm:$0xff]  ;;  %v465_v54 = vld [vmem:[%s1158_s1 + $0x68] sm:$0xff] }
  0x48   :  { %v423_v10 = vadd.f32 %v422_v20, %v404_v33  ;;  %v446_v62 = vadd.f32 %v445_v47, %v1241_v9  ;;  %v482_v46 = vmax.f32 %v462_v7, 0.0  ;;  %v500_v53 = vmin.f32 %v480_v31, 1.0  ;;  %v1245_v33 = vld [vmem:[#allocation13_spill] sm:$0xff] }
  0x49   :  { %v518_v41 = vsub.f32 %v498_v25, %v1242_v13  ;;  %v538_v38 = vmul.f32 %v516_v59, %v516_v59  ;;  %v556_v12 = vmul.f32 %v536_v22, %v1243_v57  ;;  %v483_v48 = vmax.f32 %v463_v34, 0.0  ;;  %v1247_v25 = vld [vmem:[#allocation6_spill] sm:$0xff] }
  0x4a   :  { %v424_v58 = vadd.f32 %v423_v10, %v405_v8  ;;  %v447_v26 = vadd.f32 %v446_v62, %v1244_v30  ;;  %v501_v39 = vmin.f32 %v481_v21, 1.0  ;;  %v519_v7 = vsub.f32 %v499_v15, %v1245_v33  ;;  %v466_v8 = vld [vmem:[%s1158_s1 + $0x70] sm:$0xff]  ;;  %v1248_v21 = vld [vmem:[#allocation14_spill] sm:$0xff] }
  0x4b   :  { %v539_v20 = vmul.f32 %v517_v40, %v517_v40  ;;  %v557_v47 = vmul.f32 %v537_v2, %v1246_v35  ;;  %v574_v31 = vadd.f32 %v555_v45, %v554_v32  ;;  %v484_v11 = vmax.f32 %v464_v63, 0.0  ;;  %v1249_v10 = vld [vmem:[#allocation30_spill] sm:$0xff]  ;;  %v1250_v40 = vld [vmem:[#allocation7_spill] sm:$0xff]  ;;  %v470_v35 = vld [vmem:[%s1158_s1 + $0x90] sm:$0xff] }
  0x4c   :  { %v425_v43 = vadd.f32 %v424_v58, %v406_v56  ;;  %v448_v59 = vadd.f32 %v447_v26, %v1247_v25  ;;  %v502_v22 = vmin.f32 %v482_v46, 1.0  ;;  %v520_v34 = vsub.f32 %v500_v53, %v1248_v21  ;;  %v467_v56 = vld [vmem:[%s1158_s1 + $0x78] sm:$0xff]  ;;  %v1251_v45 = vld [vmem:[#allocation15_spill] sm:$0xff] }
  0x4d   :  { %v540_v42 = vmul.f32 %v518_v41, %v518_v41  ;;  %v558_v9 = vmul.f32 %v538_v38, %v1249_v10  ;;  %v575_v62 = vadd.f32 %v574_v31, %v556_v12  ;;  %v485_v2 = vmax.f32 %v465_v54, 0.0 }
  0x4e   :  { %v426_v15 = vadd.f32 %v425_v43, %v407_v29  ;;  %v449_v13 = vadd.f32 %v448_v59, %v1250_v40  ;;  %v503_v32 = vmin.f32 %v483_v48, 1.0  ;;  %v521_v46 = vsub.f32 %v501_v39, %v1251_v45  ;;  %v468_v29 = vld [vmem:[%s1158_s1 + $0x80] sm:$0xff]  ;;  %v469_v39 = vld [vmem:[%s1158_s1 + $0x88] sm:$0xff] }
  0x4f   :  { %v541_v63 = vmul.f32 %v519_v7, %v519_v7  ;;  %v559_v57 = vmul.f32 %v539_v20, %v907_v50  ;;  %v576_v58 = vadd.f32 %v575_v62, %v557_v47  ;;  %v486_v53 = vmax.f32 %v466_v8, 0.0 }
  0x50   :  { %v504_v41 = vmin.f32 %v484_v11, 1.0  ;;  %v522_v38 = vsub.f32 %v502_v22, %v1223_v5  ;;  %v542_v12 = vmul.f32 %v520_v34, %v520_v34  ;;  %v560_v30 = vmul.f32 %v540_v42, %v910_v27  ;;  %428 = vst [vmem:[%s1159_s5] sm:$0xff] %v426_v15  ;;  %630 = vst [vmem:[%s1159_s5 + $0x8] sm:$0xff] %v449_v13 }
  0x51   :  { %v577_v26 = vadd.f32 %v576_v58, %v558_v9  ;;  %v487_v50 = vmax.f32 %v467_v56, 0.0  ;;  %v505_v48 = vmin.f32 %v485_v2, 1.0  ;;  %v523_v5 = vsub.f32 %v503_v32, %v1224_v19  ;;  %v471_v19 = vld [vmem:[%s1158_s1 + $0x98] sm:$0xff] }
  0x52   :  { %v543_v54 = vmul.f32 %v521_v46, %v521_v46  ;;  %v561_v27 = vmul.f32 %v541_v63, %v913_v14  ;;  %v488_v7 = vmax.f32 %v468_v29, 0.0  ;;  %v506_v20 = vmin.f32 %v486_v53, 1.0 }
  0x53   :  { %v578_v33 = vadd.f32 %v577_v26, %v559_v57  ;;  %v524_v47 = vsub.f32 %v504_v41, %v1225_v51  ;;  %v544_v31 = vmul.f32 %v522_v38, %v522_v38  ;;  %v562_v43 = vmul.f32 %v542_v12, %v920_v61 }
  0x54   :  { %v489_v59 = vmax.f32 %v469_v39, 0.0  ;;  %v507_v11 = vmin.f32 %v487_v50, 1.0  ;;  %v525_v14 = vsub.f32 %v505_v48, %v1226_v49  ;;  %v545_v22 = vmul.f32 %v523_v5, %v523_v5 }
  0x55   :  { %v579_v25 = vadd.f32 %v578_v33, %v560_v30  ;;  %v563_v8 = vmul.f32 %v543_v54, %v923_v0  ;;  %v490_v34 = vmax.f32 %v470_v35, 0.0  ;;  %v508_v42 = vmin.f32 %v488_v7, 1.0 }
  0x56   :  { %v526_v51 = vsub.f32 %v506_v20, %v1227_v60  ;;  %v546_v10 = vmul.f32 %v524_v47, %v524_v47  ;;  %v564_v61 = vmul.f32 %v544_v31, %v926_v1  ;;  %v491_v62 = vmax.f32 %v471_v19, 0.0 }
  0x57   :  { %v580_v21 = vadd.f32 %v579_v25, %v561_v27  ;;  %v509_v15 = vmin.f32 %v489_v59, 1.0  ;;  %v527_v40 = vsub.f32 %v507_v11, %v1228_v6  ;;  %v547_v13 = vmul.f32 %v525_v14, %v525_v14 }
  0x58   :  { %v565_v2 = vmul.f32 %v545_v22, %v933_v16  ;;  %v510_v32 = vmin.f32 %v490_v34, 1.0  ;;  %v528_v0 = vsub.f32 %v508_v42, %v1229_v36  ;;  %v548_v56 = vmul.f32 %v526_v51, %v526_v51 }
  0x59   :  { %v581_v9 = vadd.f32 %v580_v21, %v562_v43  ;;  %v566_v45 = vmul.f32 %v546_v10, %v936_v17  ;;  %v511_v60 = vmin.f32 %v491_v62, 1.0  ;;  %v529_v63 = vsub.f32 %v509_v15, %v1230_v4 }
  0x5a   :  { %v549_v1 = vmul.f32 %v527_v40, %v527_v40  ;;  %v567_v57 = vmul.f32 %v547_v13, %v939_v18  ;;  %v530_v6 = vsub.f32 %v510_v32, %v1231_v44  ;;  %v550_v53 = vmul.f32 %v528_v0, %v528_v0 }
  0x5b   :  { %v582_v49 = vadd.f32 %v581_v9, %v563_v8  ;;  %v568_v16 = vmul.f32 %v548_v56, %v942_v3  ;;  %v531_v29 = vsub.f32 %v511_v60, %v1232_v28  ;;  %v551_v36 = vmul.f32 %v529_v63, %v529_v63 }
  0x5c   :  { %v569_v38 = vmul.f32 %v549_v1, %v949_v24  ;;  %v552_v12 = vmul.f32 %v530_v6, %v530_v6  ;;  %v570_v30 = vmul.f32 %v550_v53, %v952_v52 }
  0x5d   :  { %v583_v46 = vadd.f32 %v582_v49, %v564_v61  ;;  %v553_v26 = vmul.f32 %v531_v29, %v531_v29  ;;  %v571_v18 = vmul.f32 %v551_v36, %v964_v23 }
  0x5e   :  { %v572_v44 = vmul.f32 %v552_v12, %v967_v55 }
  0x5f   :  { %v584_v58 = vadd.f32 %v583_v46, %v565_v2  ;;  %v573_v3 = vmul.f32 %v553_v26, %v1240_v37 }
  0x61   :  { %v585_v41 = vadd.f32 %v584_v58, %v566_v45 }
  0x63   :  { %v586_v17 = vadd.f32 %v585_v41, %v567_v57 }
  0x65   :  { %v587_v4 = vadd.f32 %v586_v17, %v568_v16 }
  0x67   :  { %v588_v50 = vadd.f32 %v587_v4, %v569_v38 }
  0x69   :  { %v589_v48 = vadd.f32 %v588_v50, %v570_v30 }
  0x6b   :  { %v590_v39 = vadd.f32 %v589_v48, %v571_v18 }
  0x6d   :  { %v591_v5 = vadd.f32 %v590_v39, %v572_v44 }
  0x6f   :  { %v592_v28 = vadd.f32 %v591_v5, %v573_v3 }
  0x71   :  { %632 = vst [vmem:[%s1159_s5 + $0x10] sm:$0xff] %v592_v28 }

</bundles_post_ra>
